<compile_context>
chip_gen: v7x
topology: tpu7x:2x2x1
jax: 0.10.0
libtpu: 0.0.40
codegen_flags: <defaults>
</compile_context>

<pallas_src>
import functools

import jax
import jax.numpy as jnp
from jax.experimental import pallas as pl
from jax.experimental.pallas import tpu as pltpu


_LANE = 128
_DEFAULT_MAX_TILE_N = 64 * 1024   # ~13 MiB double-buffered (f32): fits v5e/v6e/v7x VMEM
_DEFAULT_NUM_SPLITS = 2           # shard the N axis across the two TensorCores on v7x


def _mae_loss_kernel(pred_ref, labels_ref, out_ref, acc_ref, *,
                     n_true: int, tile_n: int, tiles_per_split: int,
                     approx_recip: bool):
    split = pl.program_id(0)     # "core" axis (parallel)
    step = pl.program_id(1)      # streaming axis over N tiles (arbitrary / reduction)

    @pl.when(step == 0)
    def _init():
        acc_ref[...] = jnp.zeros_like(acc_ref)

    pred = pred_ref[...].astype(jnp.float32)     # (C, tile_n): class on sublanes
    labels = labels_ref[...]                     # (1, tile_n) int32

    # Only the selected class' softmax probability is needed:
    #   p[label-1] = exp(x[label-1] - m) / sum_c exp(x_c - m)     (0 if label == 0)
    m = jnp.max(pred, axis=0, keepdims=True)                      # (1, tile_n)
    e = jnp.exp(pred - m)                                         # (C, tile_n)  (EUP)
    denom = jnp.sum(e, axis=0, keepdims=True)                     # (1, tile_n)

    cls = jax.lax.broadcasted_iota(jnp.int32, pred.shape, 0)      # class idx per sublane
    lbl = labels - 1                                              # (1, tile_n): sparse-vreg op
    selected = jnp.sum(jnp.where(cls == lbl, e, 0.0),
                       axis=0, keepdims=True)                     # (1, tile_n)

    per_sample = 1.0 - selected * pl.reciprocal(denom, approx=approx_recip)

    g = split * tiles_per_split + step            # logical (global) tile index

    @pl.when((g + 1) * tile_n <= n_true)          # fully in-bounds tile: no mask needed
    def _full_tile():
        acc_ref[...] += jnp.sum(per_sample, axis=1, keepdims=True)

    @pl.when((g + 1) * tile_n > n_true)           # edge / fully-OOB tile: select-mask
    def _edge_tile():
        col = jax.lax.broadcasted_iota(jnp.int32, per_sample.shape, 1) + g * tile_n
        # Select (never multiply): drops any inf/NaN coming from out-of-bounds lanes.
        masked = jnp.where(col < n_true, per_sample, 0.0)
        acc_ref[...] += jnp.sum(masked, axis=1, keepdims=True)

    @pl.when(step == pl.num_programs(1) - 1)
    def _finalize():
        out_ref[...] = jnp.broadcast_to(acc_ref[...], out_ref.shape)


def mae_loss_from_transposed(pred_t: jax.Array, labels: jax.Array,
                             num_classes: int = 10, scale: float = 2.0,
                             max_tile_n: int = _DEFAULT_MAX_TILE_N,
                             num_splits: int = _DEFAULT_NUM_SPLITS,
                             approx_reciprocal: bool = True) -> jax.Array:
    """MAELoss on pre-transposed logits pred_t of shape (num_classes - 1, N)."""
    c, n = pred_t.shape
    assert c == num_classes - 1, "pred must have num_classes - 1 columns (background dropped)"
    labels_2d = labels.astype(jnp.int32).reshape(1, n)

    max_tile_n = max(_LANE, (int(max_tile_n) // _LANE) * _LANE)
    tile_n = min(max_tile_n, pl.cdiv(n, _LANE) * _LANE)
    n_tiles = pl.cdiv(n, tile_n)
    num_splits = max(1, int(num_splits))
    tiles_per_split = pl.cdiv(n_tiles, num_splits)
    grid = (num_splits, tiles_per_split)

    last_tile = n_tiles - 1

    def _data_map(s, i):
        # Clamp so data fetches for logically-OOB tiles just re-read the last valid
        # tile; their contribution is dropped by the in-kernel column mask.
        return (0, jnp.minimum(s * tiles_per_split + i, last_tile))

    kernel = functools.partial(
        _mae_loss_kernel, n_true=n, tile_n=tile_n,
        tiles_per_split=tiles_per_split, approx_recip=bool(approx_reciprocal))

    # Explicit scoped-VMEM budget: double-buffered pred + labels tiles plus headroom.
    c_pad = ((c + 7) // 8) * 8
    itemsize = jnp.dtype(pred_t.dtype).itemsize
    vmem_needed = 2 * (c_pad * tile_n * itemsize + 8 * tile_n * 4) + (2 << 20)
    vmem_limit = int(max(vmem_needed, 32 * 1024 * 1024))

    out = pl.pallas_call(
        kernel,
        out_shape=jax.ShapeDtypeStruct((num_splits * 8, _LANE), jnp.float32),
        grid_spec=pltpu.PrefetchScalarGridSpec(
            num_scalar_prefetch=0,
            grid=grid,
            in_specs=[
                pl.BlockSpec((c, tile_n), _data_map),   # pred^T tile (class x samples)
                pl.BlockSpec((1, tile_n), _data_map),   # labels tile
            ],
            out_specs=pl.BlockSpec((8, _LANE), lambda s, i: (s, 0)),  # per-split partial sum
            scratch_shapes=[pltpu.VMEM((1, 1), jnp.float32)],         # running-sum accumulator
        ),
        compiler_params=pltpu.CompilerParams(
            dimension_semantics=("parallel", "arbitrary"),
            vmem_limit_bytes=vmem_limit,
        ),
    )(pred_t, labels_2d)

    partial_sums = out[::8, 0]                    # one partial sum per split / TensorCore
    return jnp.sum(partial_sums) * (float(scale) / float(n))


def mae_loss(pred: jax.Array, labels: jax.Array, num_classes: int = 10,
             scale: float = 2.0, max_tile_n: int = _DEFAULT_MAX_TILE_N,
             num_splits: int = _DEFAULT_NUM_SPLITS,
             approx_reciprocal: bool = True) -> jax.Array:
    """Pallas implementation of MAELoss.forward(pred, labels), pred: (N, num_classes-1)."""
    # TODO(synk): have the producing layer emit (C, N) logits and call
    # mae_loss_from_transposed directly to skip this transpose copy (when not fused
    # by XLA it moves ~2x the kernel's own HBM bytes on this memory-bound op).
    return mae_loss_from_transposed(pred.T, labels, num_classes=num_classes,
                                    scale=scale, max_tile_n=max_tile_n,
                                    num_splits=num_splits,
                                    approx_reciprocal=approx_reciprocal)


def _mae_loss_ref(pred, labels, num_classes=10, scale=2.0):
    p = jax.nn.softmax(pred.astype(jnp.float32), axis=1)
    one_hot = jax.nn.one_hot(labels, num_classes, dtype=jnp.float32)[:, 1:]
    loss = 1.0 - jnp.sum(one_hot * p, axis=1)
    return scale * jnp.mean(loss)


if __name__ == "__main__":
    num_classes = 10
    scale = 2.0

    key = jax.random.PRNGKey(0)
    k1, k2, k3, k4 = jax.random.split(key, 4)

    # Small case (single partial tile; second split's tile is fully out-of-bounds).
    pred = jax.random.normal(k1, (8, num_classes - 1), dtype=jnp.float32)
    labels = jax.random.randint(k2, (8,), 0, num_classes, dtype=jnp.int32)
    out = jax.block_until_ready(mae_loss(pred, labels, num_classes=num_classes, scale=scale))
    ref = _mae_loss_ref(pred, labels, num_classes=num_classes, scale=scale)
    assert jnp.allclose(out, ref, atol=2e-3, rtol=2e-3), (out, ref)

    # Multi-tile case without any wrapper padding (exercises the 2-way split, the
    # per-split accumulators, the edge-tile mask and the clamped index_map).
    pred2 = jax.random.normal(k3, (300, num_classes - 1), dtype=jnp.float32)
    labels2 = jax.random.randint(k4, (300,), 0, num_classes, dtype=jnp.int32)
    out2 = jax.block_until_ready(
        mae_loss(pred2, labels2, num_classes=num_classes, scale=scale, max_tile_n=128))
    ref2 = _mae_loss_ref(pred2, labels2, num_classes=num_classes, scale=scale)
    assert jnp.allclose(out2, ref2, atol=2e-3, rtol=2e-3), (out2, ref2)

    print("KERNEL_OK")
</pallas_src>

<mosaic_0001>
module attributes {stable_mosaic.version = 11 : i64} {
  func.func @_mae_loss_kernel(%arg0: i32, %arg1: i32, %arg2: memref<9x128xf32, #tpu.memory_space<vmem>>, %arg3: memref<1x128xi32, #tpu.memory_space<vmem>>, %arg4: memref<8x128xf32, #tpu.memory_space<vmem>>, %arg5: memref<1x1xf32, #tpu.memory_space<vmem>>) attributes {dimension_semantics = [#tpu.dimension_semantics<parallel>, #tpu.dimension_semantics<arbitrary>], iteration_bounds = array<i64: 2, 1>, scalar_prefetch = 0 : i64, scratch_operands = 1 : i64, tpu.core_type = #tpu.core_type<tc>, window_params = [{transform_indices = @transform_0, window_bounds = array<i64: 9, 128>}, {transform_indices = @transform_1, window_bounds = array<i64: 1, 128>}, {transform_indices = @transform_2, window_bounds = array<i64: 8, 128>}]} {
    %c0_i32 = arith.constant 0 : i32
    %0 = arith.cmpi eq, %arg1, %c0_i32 : i32
    %1 = arith.extui %0 : i1 to i32
    %c0_i32_0 = arith.constant 0 : i32
    %2 = arith.cmpi ne, %1, %c0_i32_0 : i32
    scf.if %2 {
      %cst_17 = arith.constant 0.000000e+00 : f32
      %40 = vector.broadcast %cst_17 : f32 to vector<1x1xf32>
      %c0_18 = arith.constant 0 : index
      %c0_19 = arith.constant 0 : index
      %41 = vector.load %arg5[%c0_18, %c0_19] : memref<1x1xf32, #tpu.memory_space<vmem>>, vector<1x1xf32>
      tpu.vector_store %arg5[%c0_18, %c0_19], %40 {strides = array<i32>} : memref<1x1xf32, #tpu.memory_space<vmem>>, vector<1x1xf32>,
    } else {
    }
    %c0 = arith.constant 0 : index
    %c0_1 = arith.constant 0 : index
    %3 = vector.load %arg2[%c0, %c0_1] : memref<9x128xf32, #tpu.memory_space<vmem>>, vector<9x128xf32>
    %c0_2 = arith.constant 0 : index
    %c0_3 = arith.constant 0 : index
    %4 = vector.load %arg3[%c0_2, %c0_3] : memref<1x128xi32, #tpu.memory_space<vmem>>, vector<1x128xi32>
    %cst = arith.constant dense<0xFF800000> : vector<128xf32>
    %5 = vector.multi_reduction <maximumf>, %3, %cst [0] : vector<9x128xf32> to vector<128xf32>
    %6 = vector.shape_cast %5 : vector<128xf32> to vector<1x128xf32>
    %7 = vector.broadcast %6 : vector<1x128xf32> to vector<9x128xf32>
    %8 = arith.subf %3, %7 : vector<9x128xf32>
    %9 = math.exp %8 : vector<9x128xf32>
    %cst_4 = arith.constant dense<0.000000e+00> : vector<128xf32>
    %10 = vector.multi_reduction <add>, %9, %cst_4 [0] : vector<9x128xf32> to vector<128xf32>
    %11 = vector.shape_cast %10 : vector<128xf32> to vector<1x128xf32>
    %12 = tpu.iota {dimensions = array<i32: 0>} : vector<9x128xi32>
    %c1_i32 = arith.constant 1 : i32
    %13 = vector.broadcast %c1_i32 : i32 to vector<1x128xi32>
    %14 = arith.subi %4, %13 : vector<1x128xi32>
    %15 = vector.broadcast %14 : vector<1x128xi32> to vector<9x128xi32>
    %16 = arith.cmpi eq, %12, %15 : vector<9x128xi32>
    %cst_5 = arith.constant 0.000000e+00 : f32
    %17 = vector.broadcast %cst_5 : f32 to vector<9x128xf32>
    %18 = arith.select %16, %9, %17 : vector<9x128xi1>, vector<9x128xf32>
    %cst_6 = arith.constant dense<0.000000e+00> : vector<128xf32>
    %19 = vector.multi_reduction <add>, %18, %cst_6 [0] : vector<9x128xf32> to vector<128xf32>
    %20 = vector.shape_cast %19 : vector<128xf32> to vector<1x128xf32>
    %21 = tpu.reciprocal %11 {approx = true} : vector<1x128xf32> -> vector<1x128xf32>
    %22 = arith.mulf %20, %21 : vector<1x128xf32>
    %cst_7 = arith.constant 1.000000e+00 : f32
    %23 = vector.broadcast %cst_7 : f32 to vector<1x128xf32>
    %24 = arith.subf %23, %22 : vector<1x128xf32>
    %c1_i32_8 = arith.constant 1 : i32
    %25 = arith.muli %arg0, %c1_i32_8 : i32
    %26 = arith.addi %25, %arg1 : i32
    %c1_i32_9 = arith.constant 1 : i32
    %27 = arith.addi %26, %c1_i32_9 : i32
    %c128_i32 = arith.constant 128 : i32
    %28 = arith.muli %27, %c128_i32 : i32
    %c8_i32 = arith.constant 8 : i32
    %29 = arith.cmpi sle, %28, %c8_i32 : i32
    %30 = arith.extui %29 : i1 to i32
    %c0_i32_10 = arith.constant 0 : i32
    %31 = arith.cmpi ne, %30, %c0_i32_10 : i32
    scf.if %31 {
      %c0_17 = arith.constant 0 : index
      %c0_18 = arith.constant 0 : index
      %40 = vector.load %arg5[%c0_17, %c0_18] : memref<1x1xf32, #tpu.memory_space<vmem>>, vector<1x1xf32>
      %cst_19 = arith.constant dense<0.000000e+00> : vector<1xf32>
      %41 = vector.multi_reduction <add>, %24, %cst_19 [1] : vector<1x128xf32> to vector<1xf32>
      %42 = vector.shape_cast %41 : vector<1xf32> to vector<1x1xf32>
      %43 = arith.addf %40, %42 : vector<1x1xf32>
      %c0_20 = arith.constant 0 : index
      %c0_21 = arith.constant 0 : index
      %44 = vector.load %arg5[%c0_20, %c0_21] : memref<1x1xf32, #tpu.memory_space<vmem>>, vector<1x1xf32>
      tpu.vector_store %arg5[%c0_20, %c0_21], %43 {strides = array<i32>} : memref<1x1xf32, #tpu.memory_space<vmem>>, vector<1x1xf32>,
    } else {
    }
    %c1_i32_11 = arith.constant 1 : i32
    %32 = arith.addi %26, %c1_i32_11 : i32
    %c128_i32_12 = arith.constant 128 : i32
    %33 = arith.muli %32, %c128_i32_12 : i32
    %c8_i32_13 = arith.constant 8 : i32
    %34 = arith.cmpi sgt, %33, %c8_i32_13 : i32
    %35 = arith.extui %34 : i1 to i32
    %c0_i32_14 = arith.constant 0 : i32
    %36 = arith.cmpi ne, %35, %c0_i32_14 : i32
    scf.if %36 {
      %40 = tpu.iota {dimensions = array<i32: 1>} : vector<1x128xi32>
      %c128_i32_17 = arith.constant 128 : i32
      %41 = arith.muli %26, %c128_i32_17 : i32
      %42 = vector.broadcast %41 : i32 to vector<1x128xi32>
      %43 = arith.addi %40, %42 : vector<1x128xi32>
      %c8_i32_18 = arith.constant 8 : i32
      %44 = vector.broadcast %c8_i32_18 : i32 to vector<1x128xi32>
      %45 = arith.cmpi slt, %43, %44 : vector<1x128xi32>
      %cst_19 = arith.constant 0.000000e+00 : f32
      %46 = vector.broadcast %cst_19 : f32 to vector<1x128xf32>
      %47 = arith.select %45, %24, %46 : vector<1x128xi1>, vector<1x128xf32>
      %c0_20 = arith.constant 0 : index
      %c0_21 = arith.constant 0 : index
      %48 = vector.load %arg5[%c0_20, %c0_21] : memref<1x1xf32, #tpu.memory_space<vmem>>, vector<1x1xf32>
      %cst_22 = arith.constant dense<0.000000e+00> : vector<1xf32>
      %49 = vector.multi_reduction <add>, %47, %cst_22 [1] : vector<1x128xf32> to vector<1xf32>
      %50 = vector.shape_cast %49 : vector<1xf32> to vector<1x1xf32>
      %51 = arith.addf %48, %50 : vector<1x1xf32>
      %c0_23 = arith.constant 0 : index
      %c0_24 = arith.constant 0 : index
      %52 = vector.load %arg5[%c0_23, %c0_24] : memref<1x1xf32, #tpu.memory_space<vmem>>, vector<1x1xf32>
      tpu.vector_store %arg5[%c0_23, %c0_24], %51 {strides = array<i32>} : memref<1x1xf32, #tpu.memory_space<vmem>>, vector<1x1xf32>,
    } else {
    }
    %c0_i32_15 = arith.constant 0 : i32
    %37 = arith.cmpi eq, %arg1, %c0_i32_15 : i32
    %38 = arith.extui %37 : i1 to i32
    %c0_i32_16 = arith.constant 0 : i32
    %39 = arith.cmpi ne, %38, %c0_i32_16 : i32
    scf.if %39 {
      %c0_17 = arith.constant 0 : index
      %c0_18 = arith.constant 0 : index
      %40 = vector.load %arg5[%c0_17, %c0_18] : memref<1x1xf32, #tpu.memory_space<vmem>>, vector<1x1xf32>
      %41 = vector.shape_cast %40 : vector<1x1xf32> to vector<1x1xf32>
      %42 = vector.broadcast %41 : vector<1x1xf32> to vector<8x128xf32>
      %c0_19 = arith.constant 0 : index
      %c0_20 = arith.constant 0 : index
      %43 = vector.load %arg4[%c0_19, %c0_20] : memref<8x128xf32, #tpu.memory_space<vmem>>, vector<8x128xf32>
      tpu.vector_store %arg4[%c0_19, %c0_20], %42 {strides = array<i32>} : memref<8x128xf32, #tpu.memory_space<vmem>>, vector<8x128xf32>,
    } else {
    }
    return
  }
  func.func @transform_0(%arg0: i32, %arg1: i32) -> (i32, i32) {
    %c1_i32 = arith.constant 1 : i32
    %0 = arith.muli %arg0, %c1_i32 : i32
    %1 = arith.addi %0, %arg1 : i32
    %c0_i32 = arith.constant 0 : i32
    %2 = arith.minsi %1, %c0_i32 : i32
    %c0_i32_0 = arith.constant 0 : i32
    %c0_i32_1 = arith.constant 0 : i32
    return %c0_i32_0, %2 : i32, i32
  }
  func.func @transform_1(%arg0: i32, %arg1: i32) -> (i32, i32) {
    %c1_i32 = arith.constant 1 : i32
    %0 = arith.muli %arg0, %c1_i32 : i32
    %1 = arith.addi %0, %arg1 : i32
    %c0_i32 = arith.constant 0 : i32
    %2 = arith.minsi %1, %c0_i32 : i32
    %c0_i32_0 = arith.constant 0 : i32
    %c0_i32_1 = arith.constant 0 : i32
    return %c0_i32_0, %2 : i32, i32
  }
  func.func @transform_2(%arg0: i32, %arg1: i32) -> (i32, i32) {
    %c0_i32 = arith.constant 0 : i32
    %c0_i32_0 = arith.constant 0 : i32
    return %arg0, %c0_i32 : i32, i32
  }
}

</mosaic_0001>

<bundles_post_ra>
// kernel: tpu_custom_call.1
= control target key start
LH: loop header
LB: loop body
LE: loop exit
PB: predicated region body
PF: predicated region fallthrough
CT: control target
= control target key end

     0   :  { %7 = vsyncpa [#allocation4], 0  ;;  %s720_s0 = inlined_call_operand.vmem [shape: f32[9,8], index: 0, kind: input, shape index: {}]   ;;  %s721_s1 = inlined_call_operand.vmem [shape: s32[1,8], index: 1, kind: input, shape index: {}]   ;;  %s722_s2 = inlined_call_operand.hbm [shape: f32[16,128], index: 2, kind: output, shape index: {}]  }
   0x1   :  { %9 = vsyncpa [#allocation4 + $0x1], 0  ;;  %s583_s9 = smov 0   ;;  %s585_s10 = smov 0  }
   0x2   :  { %s587_s11 = smov 0   ;;  %s589_s12 = smov 0  }
   0x3   :  { %s591_s13 = smov 0   ;;  %s593_s14 = smov 0  }
   0x4 LB: > { %s396_s15 = sadd.s32 4294967295, %s563_s14   ;;  %s397_s16 = sadd.s32 4294967294, %s563_s14   ;;  %s563_s14 = sphi %s593_s14, %s15_s14   ;;  %s559_s13 = sphi %s591_s13, %s729_s13   ;;  %s555_s12 = sphi %s589_s12, %s728_s12   ;;  %s551_s11 = sphi %s587_s11, %s727_s11   ;;  %s547_s10 = sphi %s585_s10, %s726_s10   ;;  %s543_s9 = sphi %s583_s9, %s725_s9  }
   0x5   : > { %s27_s17 = sadd.s32 1, %s559_s13  ;;  %s98_s18 = sadd.s32 1, %s551_s11 }
   0x6   : > { %p29_p0 = scmp.ge.s32.totalorder %s27_s17, 2  ;;  %p108_p1 = scmp.ne.s32.totalorder %s551_s11, %s547_s10 }
   0x7   : > { %p109_p2 = scmp.eq.s32.totalorder %s396_s15, 1  ;;  %p114_p3 = scmp.ne.s32.totalorder %s547_s10, %s543_s9 }
   0x8   : > { %s731_s17 = smov (%p29_p0, %s27_s17), 0  ;;  %p115_p5 = scmp.eq.s32.totalorder %s397_s16, 1 }
   0x9   : > { %p623_p4 = por %p109_p2, %p108_p1  ;;  %s95_s20 = ssub.s32 %s559_s13, %s731_s17 }
   0xa   : > { %p400_p6 = scmp.ge.s32.totalorder %s563_s14, 1  ;;  %p96_p7 = scmp.eq.s32.totalorder %s95_s20, 0 }
   0xb   : > { %p630_p8 = por %p115_p5, %p114_p3  ;;  %p158_p9 = scmp.lt.s32.totalorder %s563_s14, 3 }
   0xc   : > { %s636_s22 = scalar_select %p96_p7, %s551_s11, %s98_s18  }
   0xd   : > { %p159_p10 = pnand %p400_p6, %p158_p9 }
   0xe   : > { %s185_s23 = sand.u32 (!%p159_p10), 1, %s547_s10   ;;  %p189_p11 = scmp.lt.s32.totalorder (!%p159_p10), %s555_s12, 0  ;;  %vm211_vm0 = vcmask (!%p159_p10), 0   ;;  %v565_v0 = vmov (!%p159_p10), 0.0   ;;  %vm216_vm1 = vcmask (!%p159_p10), 1040384   ;;  %v239_v10 = vlaneseq (!%p159_p10) }
   0xf   : > { %162 = sbr.rel (%p159_p10) target bundleno = 534 (0x216), region = 28  ;;  %s642_s24 = sshll.u32 (!%p159_p10), %s185_s23, 3  ;;  %212 = vst.msk [vmem:[#allocation2] sm:$0x1] (!%p159_p10), %vm211_vm0, %v565_v0 }
  0x10   : > { %s646_s25 = sshll.u32 (!%p159_p10), %s555_s12, 7  ;;  %v240_v14 = vshrl.u32 (!%p159_p10), %v239_v10, 7  ;;  %s187_s6 = scalar_lea.vmem (!%p159_p10), [#allocation3], %s642_s24 }
  0x11   : > { %s420_s26 = sadd.s32 (!%p159_p10), 128, %s646_s25 }
  0x12   : > { %v245_v19 = vsub.s32 (!%p159_p10), 0, %v240_v14  ;;  %v241_v21 = vadd.s32 (!%p159_p10), 8, %v240_v14  ;;  %p411_p12 = scmp.gt.s32.totalorder (!%p159_p10), %s420_s26, 8 }
  0x16   : > { %s733_s12 = smov (!%p189_p11, %s555_s12), 0  ;;  %v269_v45 = vld [vmem:[#allocation2] sm:$0x1] (!%p411_p12) }
  0x17   : > { %s735_s12 = smov (!%p189_p11, %s733_s12), 0 }
  0x18   : > { %s405_s27 = sshll.u32 %s735_s12, 3  ;;  %s203_s5 = scalar_lea.vmem %s721_s1, %s735_s12 }
  0x19   : > { %s194_s30 = scalar_lea.vmem %s720_s0, %s405_s27  ;;  %v215_v15 = vld [vmem:[%s203_s5] sm:$0x1] }
  0x1a   : > { %v213_v1 = vld [vmem:[%s194_s30] sm:$0xff]  ;;  %v214_v2 = vld [vmem:[%s194_s30 + $0x8] sm:$0x1]  ;;  %v409_v18 = vadd.s32 4294967295, %v215_v15 }
  0x1b   : > { %v217_v3 = vsel %vm216_vm1, %v214_v2, -inf }
  0x1c   : > { %v218_v4 = vmax.f32 %v213_v1, %v217_v3  ;;  %v246_v20 = vrot.slane %v409_v18, %v245_v19 }
  0x1e   : > { %v219_v5 = vrot.slane %v218_v4, 4  ;;  %vm247_vm2 = vcmp.eq.s32.totalorder %v240_v14, %v246_v20  ;;  %vm248_vm3 = vcmp.eq.s32.totalorder %v241_v21, %v246_v20 }
  0x20   : > { %v220_v6 = vmax.f32 %v218_v4, %v219_v5 }
  0x22   : > { %v221_v7 = vrot.slane %v220_v6, 2 }
  0x24   : > { %v222_v8 = vmax.f32 %v220_v6, %v221_v7 }
  0x26   : > { %v223_v9 = vrot.slane %v222_v8, 1 }
  0x28   : > { %v224_v11 = vmax.f32 %v222_v8, %v223_v9 }
  0x2a   : > { %v225_v12 = vsub.f32 %v213_v1, %v224_v11  ;;  %v226_v13 = vsub.f32 %v214_v2, %v224_v11 }
  0x2c   : > { %v227_v16 = vmul.f32 1.442695, %v225_v12  ;;  %v229_v17 = vmul.f32 1.442695, %v226_v13 }
  0x2e   : > { %478 = vpow2.f32 %v227_v16 }
  0x2f   : > { %480 = vpow2.f32 %v229_v17 }
  0x38   : > { %v479_v22 = vpop.eup %478 }
  0x39   : > { %v481_v23 = vpop.eup %480  ;;  %v249_v24 = vsel %vm247_vm2, %v479_v22, 0.0 }
  0x3a   : > { %v231_v25 = vsel %vm216_vm1, %v481_v23, 0.0  ;;  %v250_v26 = vsel %vm248_vm3, %v481_v23, 0.0 }
  0x3b   : > { %v232_v27 = vadd.f32 %v479_v22, %v231_v25  ;;  %v251_v28 = vsel %vm216_vm1, %v250_v26, 0.0 }
  0x3c   : > { %v252_v29 = vadd.f32 %v251_v28, %v249_v24 }
  0x3d   : > { %v233_v30 = vrot.slane %v232_v27, 4 }
  0x3e   : > { %v253_v31 = vrot.slane %v252_v29, 4 }
  0x3f   : > { %v234_v32 = vadd.f32 %v233_v30, %v232_v27 }
  0x40   : > { %v254_v33 = vadd.f32 %v253_v31, %v252_v29 }
  0x41   : > { %v235_v34 = vrot.slane %v234_v32, 2 }
  0x42   : > { %v255_v36 = vrot.slane %v254_v33, 2 }
  0x43   : > { %v236_v35 = vadd.f32 %v235_v34, %v234_v32 }
  0x44   : > { %v256_v39 = vadd.f32 %v255_v36, %v254_v33 }
  0x45   : > { %v237_v37 = vrot.slane %v236_v35, 1 }
  0x46   : > { %v257_v40 = vrot.slane %v256_v39, 1 }
  0x47   : > { %v238_v38 = vadd.f32 %v237_v37, %v236_v35 }
  0x48   : > { %v258_v41 = vadd.f32 %v257_v40, %v256_v39 }
  0x49   : > { %482 = vrcp.f32 %v238_v38 }
  0x50   : > { %268 = sbr.rel (%p411_p12) target bundleno = 233 (0xe9), region = 36 }
  0x53   : > { %v483_v42 = vpop.eup %482 }
  0x54   : > { %v260_v43 = vmul.f32 %v483_v42, %v258_v41 }
  0x56   : > { %v261_v44 = vsub.f32 1.0, %v260_v43 }
  0x58   : > { %270 = vadd.xlane.f32.xlu0 %v261_v44 }
  0xe5   : > { %v271_v46 = vpop.xlane.xlu0 %270 }
  0xe6   : > { %v272_v47 = vadd.f32 %v271_v46, %v269_v45 }
  0xe8   : > { %274 = vst.msk [vmem:[#allocation2] sm:$0x1] %vm211_vm0, %v272_v47 }
  0xe9 PF: > { %p412_p13 = scmp.le.s32.totalorder %s420_s26, 8 }
  0xea   : > { %v280_v48 = vand.u32 (!%p412_p13), 127, %v239_v10  ;;  %v282_v49 = vstv (!%p412_p13), %s646_s25 }
  0xeb   : > { %278 = sbr.rel (%p412_p13) target bundleno = 385 (0x181), region = 40 }
  0xec   : > { %v283_v50 = vadd.s32 (!%p412_p13), %v282_v49, %v280_v48 }
  0xee   : > { %vm284_vm4 = vcmp.lt.s32.totalorder (!%p412_p13), %v283_v50, 8 }
  0xef   : > { %v285_v51 = vsel (!%p412_p13), %vm284_vm4, %v261_v44, 0.0  ;;  %v286_v52 = vld [vmem:[#allocation2] sm:$0x1] (!%p412_p13) }
  0xf0   : > { %287 = vadd.xlane.f32.xlu0 (!%p412_p13), %v285_v51 }
 0x17d   : > { %v288_v53 = vpop.xlane.xlu0 %287 }
 0x17e   : > { %v289_v54 = vadd.f32 %v288_v53, %v286_v52 }
 0x180   : > { %291 = vst.msk [vmem:[#allocation2] sm:$0x1] %vm211_vm0, %v289_v54 }
 0x181 PF: > { %v566_v56 = vmov 0   ;;  %s320_s7 = sshll.u32 %s187_s6, 4  ;;  %s671_s15 = scalar_lea.hbm %s722_s2, %s646_s25  ;;  %s673_s7 = int_to_ptr.vmem [resolvable:$true] %s320_s7 }
 0x182   : > { %484 = vset.pattern.permute.xlu0 %v566_v56  ;;  %s307_s16 = scalar_lea.sflag [#allocation4], %s185_s23  ;;  %s485_s18 = scalar_lea.vmem %s673_s7, 128 }
 0x183   : > { %p486_p0 = scmp.ne.s32.totalorder %s673_s7, %s485_s18  ;;  %s567_s20 = smov [#allocation3]  }
 0x184   : > { %s489_s24 = sshll.u32 %s567_s20, 4  ;;  %s490_s24 = int_to_ptr.vmem [resolvable:$false] %s489_s24 }
 0x185   : > { %p487_p1 = pnand %p486_p0, %p623_p4  ;;  %s491_s26 = scalar_lea.vmem %s490_s24, 256 }
 0x186   : > { %p492_p3 = scmp.lt.s32.totalorder %s673_s7, %s490_s24  ;;  %p493_p5 = scmp.lt.s32.totalorder %s491_s26, %s485_s18 }
 0x187   : > { %v414_v55 = vld [vmem:[#allocation2] ss:$0 sm:$0xff]  ;;  %p488_p2 = pneg %p487_p1 }
 0x188   : > { %302 = vperm.xlu0 %484, %v414_v55   ;;  %p494_p6 = por %p493_p5, %p492_p3 }
 0x18a   : > { %p495_p7 = pnand %p494_p6, %p488_p2 }
 0x207   : > { %v303_v57 = vpop.permute.xlu0 %302 }
 0x208   : > { %305 = vst [vmem:[%s187_s6] sm:$0xff] %v303_v57 }
 0x209   : > { %498 = shalt.err (!%p495_p7)
}
 0x20a   : > { %s499_s23 = scalar_lea.hbm %s671_s15, 128  ;;  %s503_s28 = scalar_lea.hbm %s722_s2, 256 }
 0x20b   : > { %p500_p9 = scmp.ne.s32.totalorder %s671_s15, %s499_s23  ;;  %p504_p12 = scmp.lt.u32.totalorder %s671_s15, %s722_s2 }
 0x20c   : > { %p505_p13 = scmp.lt.u32.totalorder %s503_s28, %s499_s23  ;;  %p507_p1 = scmp.lt.u32.totalorder %s499_s23, %s671_s15 }
 0x20d   : > { %p501_p10 = pnand %p500_p9, %p623_p4 }
 0x20e   : > { %p506_p0 = por %p505_p13, %p504_p12 }
 0x20f   : > { %p502_p11 = pneg %p501_p10 }
 0x210   : > { %p508_p2 = por %p507_p1, %p506_p0 }
 0x212   : > { %p509_p3 = pnand %p508_p2, %p502_p11 }
 0x214   : > { %512 = shalt.err (!%p509_p3)
}
 0x215   : > { %421 = dma.vmem_to_hbm [thread:$0]  (%p623_p4), %s673_s7, 128, %s671_s15, %s307_s16  }
 0x216 PF: > { %p427_p5 = scmp.ge.s32.totalorder %s563_s14, 2  ;;  %s332_s3 = sand.u32 1, %s543_s9  }
 0x217   : > { %s333_s4 = scalar_lea.sflag [#allocation4], %s332_s3 }
 0x218   : > { %p424_p6 = pnand %p427_p5, %p630_p8 }
 0x21a   : > { %538 = dma.done.wait (!%p424_p6), %s333_s4, 128  }
 0x21b   : > { %540 = vsyncadd (!%p424_p6), %s333_s4, 4294967168  ;;  %s15_s14 = sadd.s32 1, %s563_s14   ;;  %s725_s9 = smov %s547_s10 }
 0x21c   : > { %p12_p7 = scmp.ge.s32.totalorder %s15_s14, 4   ;;  %s726_s10 = smov %s551_s11 }
 0x21d   : > { %s727_s11 = smov %s636_s22  ;;  %s728_s12 = smov %s559_s13 }
 0x21e   : > { %s729_s13 = smov %s731_s17  ;;  %14 = sbr.rel (!%p12_p7) target bundleno = 4 (0x4), region = 82 }
 0x225   :  { %338 = vsyncpa [#allocation4], 1 }
 0x226   :  { %340 = vsyncpa [#allocation4 + $0x1], 1 }

</bundles_post_ra>
